<compile_context>
chip_gen: v6e
topology: v6e:2x2x1
jax: 0.10.0
libtpu: 0.0.40
codegen_flags: <defaults>
</compile_context>

<pallas_src>
import functools
import math

import jax
import jax.numpy as jnp
from jax.experimental import pallas as pl
from jax.experimental.pallas import tpu as pltpu

_LANE = 128
# ~2 MiB of useful data per tile buffer: HBM roofline already saturates here on
# v5e/v6e/v7x, and 2x(in)+2x(out) buffers ~= 8 MiB fits every generation.
_TILE_BYTES = 2 * 1024 * 1024


def _round_up(n: int, m: int) -> int:
    return ((n + m - 1) // m) * m


def _pick_tile_rows(rows_per_sample: int, itemsize: int) -> int:
    """Rows per tile: multiple of the full-density sublane quantum, sized so a
    (tr, 128) tile carries ~2 MiB of useful data (byte budget governs, no hard
    lane cap)."""
    sub = max(8, 32 // itemsize)  # 8 rows f32, 16 rows bf16, 32 rows int8/fp8
    budget = max(sub, (_TILE_BYTES // (_LANE * itemsize)) // sub * sub)
    return min(budget, _round_up(rows_per_sample, sub))


def _drop_path_kernel(inv_keep_prob, keep_ref, x_ref, o_ref):
    """keep_ref: SMEM int32[B] per-sample keep flags (scalar prefetch).
    x_ref / o_ref: VMEM (1, TR, 128) lane-dense tile of one sample's slab."""
    b = pl.program_id(0)
    # Scalar-unit work (free in a mem-bound kernel): keep * 1/keep_prob.
    scale = keep_ref[b].astype(jnp.float32) * inv_keep_prob
    o_ref[...] = x_ref[...] * scale.astype(x_ref.dtype)


def drop_path(x, drop_prob: float, training: bool, key=None, seed: int = 0):
    """DropPath forward. x: [B, ...] (e.g. NCHW). Returns same shape/dtype."""
    if drop_prob is None or drop_prob == 0.0 or not training:
        return x
    drop_prob = float(drop_prob)
    if drop_prob >= 1.0:
        # Every sample dropped; avoids the reference's 0 * inf = NaN.
        return jnp.zeros_like(x)
    keep_prob = 1.0 - drop_prob

    B = x.shape[0]
    F = math.prod(x.shape[1:])

    # NOTE: callers must thread a fresh key (or seed) per layer & step; a fixed
    # default seed reuses the same stochastic-depth mask on every call.
    if key is None:
        key = jax.random.PRNGKey(seed)
    keep = jax.random.bernoulli(key, p=keep_prob, shape=(B,)).astype(jnp.int32)

    # Lane-dense (B, R, 128) view; pad F up to a multiple of 128 if needed so we
    # always keep a real, pipelined grid with unmasked lane-dense stores.
    F_pad = _round_up(F, _LANE)
    x2d = x.reshape(B, F)
    if F_pad != F:
        x2d = jnp.pad(x2d, ((0, 0), (0, F_pad - F)))
    rows = F_pad // _LANE
    x3d = x2d.reshape(B, rows, _LANE)

    itemsize = x3d.dtype.itemsize
    tr = _pick_tile_rows(rows, itemsize)
    grid = (B, pl.cdiv(rows, tr))

    kernel = functools.partial(_drop_path_kernel, 1.0 / keep_prob)

    out3d = pl.pallas_call(
        kernel,
        out_shape=jax.ShapeDtypeStruct((B, rows, _LANE), x.dtype),
        grid_spec=pltpu.PrefetchScalarGridSpec(
            num_scalar_prefetch=1,
            grid=grid,
            in_specs=[
                pl.BlockSpec((1, tr, _LANE), lambda b, t, keep: (b, t, 0)),
            ],
            out_specs=pl.BlockSpec((1, tr, _LANE), lambda b, t, keep: (b, t, 0)),
        ),
        # Inputs are (keep, x3d); alias x3d (index 1, counting the prefetch
        # operand) onto the output so the multiply runs in place.
        input_output_aliases={1: 0},
        compiler_params=pltpu.CompilerParams(
            dimension_semantics=("parallel", "parallel"),
            vmem_limit_bytes=32 * 1024 * 1024,
        ),
        cost_estimate=pl.CostEstimate(
            flops=B * rows * _LANE,
            transcendentals=0,
            bytes_accessed=2 * B * rows * _LANE * itemsize + B * 4,
        ),
    )(keep, x3d)

    out2d = out3d.reshape(B, F_pad)
    if F_pad != F:
        out2d = out2d[:, :F]
    return out2d.reshape(x.shape)


class DropPath:
    """JAX/Pallas port of the PyTorch DropPath module."""

    def __init__(self, drop_prob=None):
        self.drop_prob = drop_prob
        self.training = True

    def __call__(self, x, key=None, seed: int = 0):
        return drop_path(x, self.drop_prob, self.training, key=key, seed=seed)


if __name__ == "__main__":
    key = jax.random.PRNGKey(0)
    # Small NCHW input consistent with a backbone residual branch.
    x = jax.random.normal(key, (2, 4, 16, 16), dtype=jnp.float32)

    module = DropPath(drop_prob=0.25)

    # Training mode: stochastic per-sample drop, applied by the Pallas kernel.
    module.training = True
    y_train = jax.block_until_ready(module(x, key=jax.random.PRNGKey(1)))

    # Sanity: each sample is either all-zero or x / keep_prob for that sample.
    keep_prob = 1.0 - 0.25
    for b in range(x.shape[0]):
        yb = y_train[b]
        zero = bool(jnp.all(yb == 0.0))
        scaled = bool(jnp.allclose(yb, x[b] / keep_prob, atol=1e-5, rtol=1e-5))
        assert zero or scaled, "per-sample drop-path semantics violated"

    # Unaligned-F + bf16 path (exercises the pad-to-128 branch).
    xb = jax.random.normal(jax.random.PRNGKey(2), (2, 3, 5, 7), dtype=jnp.bfloat16)
    yb_all = jax.block_until_ready(
        drop_path(xb, 0.5, True, key=jax.random.PRNGKey(3))
    )
    assert yb_all.shape == xb.shape and yb_all.dtype == xb.dtype
    for b in range(xb.shape[0]):
        yb = yb_all[b].astype(jnp.float32)
        ref = xb[b].astype(jnp.float32) * 2.0
        zero = bool(jnp.all(yb == 0.0))
        scaled = bool(jnp.allclose(yb, ref, atol=2e-2, rtol=2e-2))
        assert zero or scaled, "bf16/unaligned drop-path semantics violated"

    # Eval mode (or drop_prob == 0): identity pass-through.
    module.training = False
    y_eval = jax.block_until_ready(module(x))
    assert bool(jnp.array_equal(y_eval, x))

    print("KERNEL_OK")
</pallas_src>

<mosaic_0001>
module attributes {stable_mosaic.version = 11 : i64} {
  func.func @_drop_path_kernel(%arg0: i32, %arg1: i32, %arg2: memref<2xi32, #tpu.memory_space<smem>>, %arg3: memref<1x8x128xf32, #tpu.memory_space<vmem>>, %arg4: memref<1x8x128xf32, #tpu.memory_space<vmem>>) attributes {dimension_semantics = [#tpu.dimension_semantics<parallel>, #tpu.dimension_semantics<parallel>], iteration_bounds = array<i64: 2, 1>, scalar_prefetch = 1 : i64, scratch_operands = 0 : i64, tpu.core_type = #tpu.core_type<tc>, window_params = [{transform_indices = @transform_0, window_bounds = array<i64: 1, 8, 128>}, {transform_indices = @transform_1, window_bounds = array<i64: 1, 8, 128>}]} {
    %0 = arith.index_cast %arg0 : i32 to index
    %1 = memref.load %arg2[%0] : memref<2xi32, #tpu.memory_space<smem>>
    %2 = arith.sitofp %1 : i32 to f32
    %cst = arith.constant 1.33333337 : f32
    %3 = arith.mulf %2, %cst : f32
    %c0 = arith.constant 0 : index
    %c0_0 = arith.constant 0 : index
    %c0_1 = arith.constant 0 : index
    %4 = vector.load %arg3[%c0, %c0_0, %c0_1] : memref<1x8x128xf32, #tpu.memory_space<vmem>>, vector<1x8x128xf32>
    %5 = vector.broadcast %3 : f32 to vector<1x8x128xf32>
    %6 = arith.mulf %4, %5 : vector<1x8x128xf32>
    %c0_2 = arith.constant 0 : index
    %c0_3 = arith.constant 0 : index
    %c0_4 = arith.constant 0 : index
    %7 = vector.load %arg4[%c0_2, %c0_3, %c0_4] : memref<1x8x128xf32, #tpu.memory_space<vmem>>, vector<1x8x128xf32>
    tpu.vector_store %arg4[%c0_2, %c0_3, %c0_4], %6 {strides = array<i32>} : memref<1x8x128xf32, #tpu.memory_space<vmem>>, vector<1x8x128xf32>,
    return
  }
  func.func @transform_0(%arg0: i32, %arg1: i32, %arg2: memref<2xi32, #tpu.memory_space<smem>>) -> (i32, i32, i32) {
    %c0_i32 = arith.constant 0 : i32
    %c0_i32_0 = arith.constant 0 : i32
    return %arg0, %arg1, %c0_i32 : i32, i32, i32
  }
  func.func @transform_1(%arg0: i32, %arg1: i32, %arg2: memref<2xi32, #tpu.memory_space<smem>>) -> (i32, i32, i32) {
    %c0_i32 = arith.constant 0 : i32
    %c0_i32_0 = arith.constant 0 : i32
    return %arg0, %arg1, %c0_i32 : i32, i32, i32
  }
}

</mosaic_0001>

<bundles_post_ra>
// kernel: tpu_custom_call.1
= control target key start
LH: loop header
LB: loop body
LE: loop exit
PB: predicated region body
PF: predicated region fallthrough
CT: control target
= control target key end

     0   :  { %s614_s0 = inlined_call_operand.vmem [shape: s32[2], index: 0, kind: input, shape index: {}]   ;;  %s615_s1 = inlined_call_operand.hbm [shape: f32[2,8,128], index: 1, kind: input, shape index: {}, may-alias: {1,2}]   ;;  %s616_s2 = inlined_call_operand.hbm [shape: f32[2,8,128], index: 2, kind: output, shape index: {}, may-alias: {1,2}]  }
   0x1   :  { %s7_s11 = sshll.u32 %s614_s0, 4  ;;  %s8_s11 = int_to_ptr.vmem [resolvable:$true] %s7_s11 }
   0x2   :  { %s334_s12 = scalar_lea.vmem %s8_s11, 16  ;;  %p339_p1 = scmp.lt.s32.totalorder %s8_s11, %s8_s11 }
   0x3   :  { %p335_p0 = scmp.ne.s32.totalorder %s8_s11, %s334_s12  ;;  %p340_p2 = scmp.lt.s32.totalorder %s334_s12, %s334_s12 }
   0x5   :  { %p341_p3 = por %p340_p2, %p339_p1 }
   0x7   :  { %p342_p4 = pnand %p341_p3, %p335_p0 }
   0x9   :  { %345 = shalt.err (!%p342_p4)  }
   0xa   :  { %s458_s13 = smov [#allocation3]  }
   0xb   :  { %10 = dma.vmem_to_smem %s8_s11, 16, %s458_s13, [#allocation2] }
   0xc   :  { %424 = dma.done.wait [#allocation2], 16 }
   0xd   :  { %425 = vsyncadd [#allocation2], 4294967280 }
   0xe   :  { %12 = sfence }
   0xf   :  { %13 = vsyncpa [#allocation5], 0 }
  0x10   :  { %15 = vsyncpa [#allocation5 + $0x1], 0 }
  0x11   :  { %16 = vsyncpa [#allocation6], 0 }
  0x12   :  { %18 = vsyncpa [#allocation6 + $0x1], 0  ;;  %s479_s14 = smov 0   ;;  %s481_s0 = smov 0  }
  0x13   :  { %s483_s15 = smov 0   ;;  %s485_s16 = smov 0  }
  0x14   :  { %s487_s17 = smov 0   ;;  %s489_s18 = smov 0  }
  0x15 LB: > { %s258_s19 = sadd.s32 4294967295, %s456_s18   ;;  %s259_s20 = sadd.s32 4294967294, %s456_s18   ;;  %s456_s18 = sphi %s489_s18, %s24_s18   ;;  %s452_s17 = sphi %s487_s17, %s628_s17   ;;  %s448_s16 = sphi %s485_s16, %s627_s16   ;;  %s444_s15 = sphi %s483_s15, %s626_s15   ;;  %s440_s0 = sphi %s481_s0, %s625_s0   ;;  %s436_s14 = sphi %s479_s14, %s624_s14  }
  0x16   : > { %s36_s21 = sadd.s32 1, %s452_s17  ;;  %s45_s22 = sadd.s32 1, %s444_s15 }
  0x17   : > { %p38_p5 = scmp.ge.s32.totalorder %s36_s21, 2  ;;  %p52_p6 = scmp.ne.s32.totalorder %s444_s15, %s440_s0 }
  0x18   : > { %p53_p7 = scmp.eq.s32.totalorder %s456_s18, 0  ;;  %p58_p8 = scmp.ne.s32.totalorder %s440_s0, %s436_s14 }
  0x19   : > { %s630_s21 = smov (%p38_p5, %s36_s21), 0  ;;  %p59_p10 = scmp.eq.s32.totalorder %s258_s19, 0 }
  0x1a   : > { %p520_p9 = por %p53_p7, %p52_p6  ;;  %s40_s24 = ssub.s32 %s452_s17, %s630_s21 }
  0x1b   : > { %p84_p11 = scmp.eq.s32.totalorder %s258_s19, 1  ;;  %p43_p12 = scmp.eq.s32.totalorder %s40_s24, 0 }
  0x1c   : > { %p526_p13 = por %p59_p10, %p58_p8  ;;  %p90_p1 = scmp.eq.s32.totalorder %s259_s20, 1 }
  0x1d   : > { %p530_p0 = por %p84_p11, %p52_p6  ;;  %p283_p4 = scmp.lt.s32.totalorder %s456_s18, 2 }
  0x1e   : > { %s535_s27 = scalar_select %p43_p12, %s444_s15, %s45_s22  }
  0x1f   : > { %p537_p2 = por %p90_p1, %p58_p8  ;;  %s110_s29 = sand.u32 1, %s444_s15  }
  0x20   : > { %s262_s30 = sshll.u32 %s110_s29, 3  ;;  %s263_s3 = sshll.u32 %s452_s17, 7 }
  0x21   : > { %s620_s28 = scalar_select %p537_p2, 1, 0 }
  0x22   : > { %s120_s6 = scalar_lea.hbm %s615_s1, %s263_s3  ;;  %s114_s7 = scalar_lea.vmem [#allocation4], %s262_s30 }
  0x23   : > { %s122_s8 = sshll.u32 %s114_s7, 4  ;;  %p550_p5 = pnand %p283_p4, %p520_p9  ;;  %s123_s8 = int_to_ptr.vmem [resolvable:$true] %s122_s8 }
  0x24   : > { %p264_p6 = scmp.ge.s32.totalorder %s456_s18, 1  ;;  %p127_p7 = scmp.lt.s32.totalorder %s456_s18, 3 }
  0x25   : > { %s111_s10 = scalar_lea.sflag [#allocation5], %s110_s29  ;;  %p348_p8 = pneg %p550_p5 }
  0x26   : > { %s359_s11 = scalar_lea.vmem %s123_s8, 128  ;;  %s459_s12 = smov [#allocation4]  }
  0x27   : > { %p360_p10 = scmp.ne.s32.totalorder %s123_s8, %s359_s11  ;;  %s364_s13 = sshll.u32 %s459_s12, 4  ;;  %s365_s13 = int_to_ptr.vmem [resolvable:$false] %s364_s13 }
  0x28   : > { %s366_s19 = scalar_lea.vmem %s365_s13, 256  ;;  %p367_p1 = scmp.lt.s32.totalorder %s123_s8, %s365_s13 }
  0x29   : > { %p362_p11 = pnand %p360_p10, %p348_p8  ;;  %p368_p3 = scmp.lt.s32.totalorder %s366_s19, %s359_s11 }
  0x2b   : > { %p363_p12 = pneg %p362_p11  ;;  %p369_p9 = por %p368_p3, %p367_p1 }
  0x2d   : > { %p370_p4 = pnand %p369_p9, %p363_p12 }
  0x2f   : > { %373 = shalt.err (!%p370_p4)
}
  0x30   : > { %278 = dma.hbm_to_vmem [thread:$0]  (!%p550_p5), %s120_s6, 128, %s123_s8, %s111_s10  }
  0x31   : > { %p128_p2 = pnand %p264_p6, %p127_p7 }
  0x32   : > { %s565_s20 = sand.u32 (!%p128_p2), 1, %s440_s0  }
  0x33   : > { %131 = sbr.rel (%p128_p2) target bundleno = 83 (0x53), region = 24  ;;  %s265_s22 = sshll.u32 (!%p128_p2), %s565_s20, 3 }
  0x34   : > { %s134_s23 = scalar_lea.sflag (!%p128_p2), [#allocation5], %s565_s20  ;;  %s137_s24 = scalar_lea.vmem (!%p128_p2), [#allocation4], %s265_s22 }
  0x38   : > { %427 = dma.done.wait (%p526_p13), %s134_s23, 128  }
  0x39   : > { %429 = vsyncadd (%p526_p13), %s134_s23, 4294967168  ;;  %s156_s29 = sld [smem:[#allocation3 + %s448_s16]]  ;;  %s155_s3 = scalar_lea.vmem [#allocation7], %s265_s22  ;;  %v159_v0 = vld [vmem:[%s137_s24] sm:$0xff] }
  0x3a   : > { %s178_s4 = sshll.u32 %s155_s3, 4  ;;  %s268_s6 = sshll.u32 %s448_s16, 7  ;;  %s179_s4 = int_to_ptr.vmem [resolvable:$true] %s178_s4 }
  0x3b   : > { %s176_s9 = scalar_lea.hbm %s616_s2, %s268_s6  ;;  %s164_s25 = scalar_lea.sflag [#allocation6], %s565_s20 }
  0x3c   : > { %s374_s10 = scalar_lea.vmem %s179_s4, 128  ;;  %s460_s11 = smov [#allocation7]  }
  0x3d   : > { %p375_p13 = scmp.ne.s32.totalorder %s179_s4, %s374_s10  ;;  %s378_s12 = sshll.u32 %s460_s11, 4  ;;  %s379_s12 = int_to_ptr.vmem [resolvable:$false] %s378_s12 }
  0x3e   : > { %s380_s13 = scalar_lea.vmem %s379_s12, 256  ;;  %p381_p5 = scmp.lt.s32.totalorder %s179_s4, %s379_s12 }
  0x3f   : > { %s157_s30 = scvt.s32.f32 %s156_s29  ;;  %p376_p2 = pnand %p375_p13, %p530_p0 }
  0x40   : > { %p382_p6 = scmp.lt.s32.totalorder %s380_s13, %s374_s10 }
  0x41   : > { %s158_s5 = smul.f32 1.3333334, %s157_s30  ;;  %p377_p3 = pneg %p376_p2 }
  0x42   : > { %p383_p7 = por %p382_p6, %p381_p5 }
  0x43   : > { %v160_v1 = vstv %s158_s5 }
  0x44   : > { %v161_v2 = vmul.f32 %v160_v1, %v159_v0  ;;  %p384_p8 = pnand %p383_p7, %p377_p3 }
  0x46   : > { %162 = vst [vmem:[%s155_s3] sm:$0xff] %v161_v2 }
  0x47   : > { %387 = shalt.err (!%p384_p8)
}
  0x48   : > { %s388_s16 = scalar_lea.hbm %s176_s9, 128  ;;  %s392_s22 = scalar_lea.hbm %s616_s2, 256 }
  0x49   : > { %p389_p10 = scmp.ne.s32.totalorder %s176_s9, %s388_s16  ;;  %p393_p1 = scmp.lt.s32.totalorder %s176_s9, %s616_s2 }
  0x4a   : > { %p394_p9 = scmp.lt.s32.totalorder %s392_s22, %s388_s16 }
  0x4b   : > { %p390_p11 = pnand %p389_p10, %p530_p0 }
  0x4c   : > { %p395_p4 = por %p394_p9, %p393_p1 }
  0x4d   : > { %p391_p12 = pneg %p390_p11 }
  0x4f   : > { %p396_p13 = pnand %p395_p4, %p391_p12 }
  0x51   : > { %399 = shalt.err (!%p396_p13)
}
  0x52   : > { %273 = dma.vmem_to_hbm [thread:$0]  (%p530_p0), %s179_s4, 128, %s176_s9, %s164_s25  }
  0x53 PF: > { %s190_s29 = sand.u32 1, %s436_s14   ;;  %p622_p2 = scmp.ne.s32.totalorder %s620_s28, 0 }
  0x54   : > { %p623_p3 = scmp.ge.s32.totalorder %s456_s18, 2  ;;  %s191_s30 = scalar_lea.sflag [#allocation6], %s190_s29 }
  0x56   : > { %p280_p5 = pnand %p623_p3, %p622_p2 }
  0x58   : > { %p281_p6 = pneg %p280_p5 }
  0x5a   : > { %431 = dma.done.wait (%p281_p6), %s191_s30, 128  }
  0x5b   : > { %433 = vsyncadd (%p281_p6), %s191_s30, 4294967168  ;;  %s24_s18 = sadd.s32 1, %s456_s18   ;;  %s624_s14 = smov %s440_s0 }
  0x5c   : > { %p21_p7 = scmp.ge.s32.totalorder %s24_s18, 4   ;;  %s625_s0 = smov %s444_s15 }
  0x5d   : > { %s626_s15 = smov %s535_s27  ;;  %s627_s16 = smov %s452_s17 }
  0x5e   : > { %s628_s17 = smov %s630_s21  ;;  %23 = sbr.rel (!%p21_p7) target bundleno = 21 (0x15), region = 69 }
  0x63   :  { %196 = vsyncpa [#allocation5], 1 }
  0x64   :  { %198 = vsyncpa [#allocation5 + $0x1], 1 }
  0x65   :  { %199 = vsyncpa [#allocation6], 1 }
  0x66   :  { %201 = vsyncpa [#allocation6 + $0x1], 1 }

</bundles_post_ra>
